<compile_context>
chip_gen: v6e
topology: v6e:2x2x1
jax: 0.10.0
libtpu: 0.0.40
codegen_flags: <defaults>
</compile_context>

<pallas_src>
import jax
import jax.numpy as jnp
from jax import lax
from jax.experimental import pallas as pl
from jax.experimental.pallas import tpu as pltpu


def _head_kernel(x_ref, wq_ref, wk_ref, wv_ref, o_ref):
    # x_ref:  (B, T, C)   full batch
    # wq_ref: (C, H)      already scaled by 1/sqrt(H)
    # wk_ref: (C, H)
    # wv_ref: (C, H)
    # o_ref:  (B, T, H)
    B, T, C = x_ref.shape
    H = wq_ref.shape[1]

    x = x_ref[...]

    # Three small projections, each a (B,T,C)x(C,H) MXU matmul.  Keeping the
    # weights separate avoids the mid-vreg lane slices / reshapes a fused
    # (C,3H) projection would require at H=16.
    proj_dims = (((2,), (0,)), ((), ()))  # contract C, no batch dims
    q = lax.dot_general(x, wq_ref[...], proj_dims,
                        preferred_element_type=jnp.float32)   # (B,T,H) pre-scaled
    k = lax.dot_general(x, wk_ref[...], proj_dims,
                        preferred_element_type=jnp.float32)   # (B,T,H)
    v = lax.dot_general(x, wv_ref[...], proj_dims,
                        preferred_element_type=jnp.float32)   # (B,T,H)

    # attention scores (B,T,T): contract the last dims directly (no explicit
    # k transpose -> no XLU relayout).
    wei = lax.dot_general(
        q, k,
        dimension_numbers=(((2,), (2,)), ((0,), (0,))),
        preferred_element_type=jnp.float32)                    # (B,T,T)

    # causal mask (lower triangular); >=2D iota as required on TPU.
    row = lax.broadcasted_iota(jnp.int32, (T, T), 0)
    col = lax.broadcasted_iota(jnp.int32, (T, T), 1)
    mask = (col <= row)[None, :, :]                            # (1,T,T)

    # numerically-stable softmax with the mask fused into the exp.
    # Every row contains its diagonal, so the masked row max is always finite;
    # no -inf is ever materialized.
    neg_fill = jnp.float32(-3.0e38)
    m = jnp.max(jnp.where(mask, wei, neg_fill), axis=-1, keepdims=True)
    e = jnp.where(mask, jnp.exp(wei - m), jnp.float32(0.0))
    denom = jnp.sum(e, axis=-1, keepdims=True)
    p = e * pl.reciprocal(denom, approx=False)

    # (dropout skipped: eval-mode forward)

    out = lax.dot_general(
        p, v,
        dimension_numbers=(((2,), (1,)), ((0,), (0,))),
        preferred_element_type=jnp.float32)                    # (B,T,H)

    o_ref[...] = out.astype(o_ref.dtype)


def prepare_head_params(wq, wk, wv):
    """One-time (off the hot path) weight prep: fold 1/sqrt(H) into Wq."""
    H = wq.shape[1]
    return wq * (H ** -0.5), wk, wv


def head_forward(x, wq_scaled, wk, wv):
    """x: (B,T,C) f32; wq_scaled/wk/wv: (C,H) f32 (wq pre-scaled) -> (B,T,H)."""
    B, T, C = x.shape
    H = wq_scaled.shape[1]

    return pl.pallas_call(
        _head_kernel,
        out_shape=jax.ShapeDtypeStruct((B, T, H), x.dtype),
        grid_spec=pltpu.PrefetchScalarGridSpec(
            num_scalar_prefetch=0,
            grid=(1,),  # whole (tiny) problem in one invocation
            in_specs=[
                pl.BlockSpec((B, T, C), lambda i: (0, 0, 0)),
                pl.BlockSpec((C, H), lambda i: (0, 0)),
                pl.BlockSpec((C, H), lambda i: (0, 0)),
                pl.BlockSpec((C, H), lambda i: (0, 0)),
            ],
            out_specs=pl.BlockSpec((B, T, H), lambda i: (0, 0, 0)),
        ),
        compiler_params=pltpu.CompilerParams(
            dimension_semantics=("arbitrary",)),
    )(x, wq_scaled, wk, wv)


def _reference(x, wq, wk, wv):
    """Pure-JAX reference matching the PyTorch forward (eval mode)."""
    k = x @ wk
    q = x @ wq
    v = x @ wv
    scale = k.shape[-1] ** (-0.5)
    wei = jnp.einsum("btd,bsd->bts", q, k) * scale
    T = x.shape[1]
    mask = jnp.tril(jnp.ones((T, T), dtype=bool))
    wei = jnp.where(mask[None, :, :], wei, -jnp.inf)
    wei = jax.nn.softmax(wei, axis=-1)
    return jnp.einsum("bts,bsd->btd", wei, v)


if __name__ == "__main__":
    # Small config implied by the module: n_embd = C = 32, T = 8, head_size = 16, B = 2
    B, T, C, H = 2, 8, 32, 16

    key = jax.random.PRNGKey(0)
    kx, kk, kq, kv = jax.random.split(key, 4)

    x = jax.random.normal(kx, (B, T, C), dtype=jnp.float32)
    # nn.Linear(C, H, bias=False) weight is (H, C); we build the transposed
    # (C, H) matrices directly so the kernel does x @ W.
    wk = jax.random.normal(kk, (C, H), dtype=jnp.float32) * 0.02
    wq = jax.random.normal(kq, (C, H), dtype=jnp.float32) * 0.02
    wv = jax.random.normal(kv, (C, H), dtype=jnp.float32) * 0.02

    # One-time weight prep (scale fold) — outside the per-call path.
    wq_s, wk_p, wv_p = prepare_head_params(wq, wk, wv)
    wq_s, wk_p, wv_p = jax.block_until_ready((wq_s, wk_p, wv_p))

    out = head_forward(x, wq_s, wk_p, wv_p)
    out = jax.block_until_ready(out)

    ref = _reference(x, wq, wk, wv)
    assert out.shape == (B, T, H)
    assert jnp.allclose(out, ref, atol=1e-4, rtol=1e-4), "mismatch vs reference"

    print("KERNEL_OK")
</pallas_src>

<mosaic_0001>
module attributes {stable_mosaic.version = 11 : i64} {
  func.func @_head_kernel(%arg0: i32, %arg1: memref<2x8x32xf32, #tpu.memory_space<vmem>>, %arg2: memref<32x16xf32, #tpu.memory_space<vmem>>, %arg3: memref<32x16xf32, #tpu.memory_space<vmem>>, %arg4: memref<32x16xf32, #tpu.memory_space<vmem>>, %arg5: memref<2x8x16xf32, #tpu.memory_space<vmem>>) attributes {dimension_semantics = [#tpu.dimension_semantics<arbitrary>], iteration_bounds = array<i64: 1>, scalar_prefetch = 0 : i64, scratch_operands = 0 : i64, tpu.core_type = #tpu.core_type<tc>, window_params = [{pipeline_mode = #tpu.pipeline_mode<synchronous>, transform_indices = @transform_0, window_bounds = array<i64: 2, 8, 32>}, {pipeline_mode = #tpu.pipeline_mode<synchronous>, transform_indices = @transform_1, window_bounds = array<i64: 32, 16>}, {pipeline_mode = #tpu.pipeline_mode<synchronous>, transform_indices = @transform_2, window_bounds = array<i64: 32, 16>}, {pipeline_mode = #tpu.pipeline_mode<synchronous>, transform_indices = @transform_3, window_bounds = array<i64: 32, 16>}, {pipeline_mode = #tpu.pipeline_mode<synchronous>, transform_indices = @transform_4, window_bounds = array<i64: 2, 8, 16>}]} {
    %c0 = arith.constant 0 : index
    %c0_0 = arith.constant 0 : index
    %c0_1 = arith.constant 0 : index
    %0 = vector.load %arg1[%c0, %c0_0, %c0_1] : memref<2x8x32xf32, #tpu.memory_space<vmem>>, vector<2x8x32xf32>
    %c0_2 = arith.constant 0 : index
    %c0_3 = arith.constant 0 : index
    %1 = vector.load %arg2[%c0_2, %c0_3] : memref<32x16xf32, #tpu.memory_space<vmem>>, vector<32x16xf32>
    %cst = arith.constant dense<0.000000e+00> : vector<2x8x16xf32>
    %2 = tpu.matmul %0, %1, %cst {dimension_numbers = #tpu.dot_dimension_numbers<[2], [0], [0, 1], [1], [0, 0, 0, 1, 1, 1], [], []>} : vector<2x8x32xf32>, vector<32x16xf32>, vector<2x8x16xf32> -> vector<2x8x16xf32>
    %c0_4 = arith.constant 0 : index
    %c0_5 = arith.constant 0 : index
    %3 = vector.load %arg3[%c0_4, %c0_5] : memref<32x16xf32, #tpu.memory_space<vmem>>, vector<32x16xf32>
    %cst_6 = arith.constant dense<0.000000e+00> : vector<2x8x16xf32>
    %4 = tpu.matmul %0, %3, %cst_6 {dimension_numbers = #tpu.dot_dimension_numbers<[2], [0], [0, 1], [1], [0, 0, 0, 1, 1, 1], [], []>} : vector<2x8x32xf32>, vector<32x16xf32>, vector<2x8x16xf32> -> vector<2x8x16xf32>
    %c0_7 = arith.constant 0 : index
    %c0_8 = arith.constant 0 : index
    %5 = vector.load %arg4[%c0_7, %c0_8] : memref<32x16xf32, #tpu.memory_space<vmem>>, vector<32x16xf32>
    %cst_9 = arith.constant dense<0.000000e+00> : vector<2x8x16xf32>
    %6 = tpu.matmul %0, %5, %cst_9 {dimension_numbers = #tpu.dot_dimension_numbers<[2], [0], [0, 1], [1], [0, 0, 0, 1, 1, 1], [], []>} : vector<2x8x32xf32>, vector<32x16xf32>, vector<2x8x16xf32> -> vector<2x8x16xf32>
    %cst_10 = arith.constant dense<0.000000e+00> : vector<2x8x8xf32>
    %7 = tpu.matmul %2, %4, %cst_10 {dimension_numbers = #tpu.dot_dimension_numbers<[2], [2], [1], [1], [0, 0, 0, 1, 1, 1], [0], [0]>} : vector<2x8x16xf32>, vector<2x8x16xf32>, vector<2x8x8xf32> -> vector<2x8x8xf32>
    %8 = tpu.iota {dimensions = array<i32: 0>} : vector<8x8xi32>
    %9 = tpu.iota {dimensions = array<i32: 1>} : vector<8x8xi32>
    %10 = arith.cmpi sle, %9, %8 : vector<8x8xi32>
    %11 = vector.shape_cast %10 : vector<8x8xi1> to vector<1x8x8xi1>
    %cst_11 = arith.constant -3.000000e+38 : f32
    %12 = vector.shape_cast %11 : vector<1x8x8xi1> to vector<1x8x8xi1>
    %13 = vector.broadcast %12 : vector<1x8x8xi1> to vector<2x8x8xi1>
    %14 = vector.broadcast %cst_11 : f32 to vector<2x8x8xf32>
    %15 = arith.select %13, %7, %14 : vector<2x8x8xi1>, vector<2x8x8xf32>
    %cst_12 = arith.constant dense<0xFF800000> : vector<2x8xf32>
    %16 = vector.multi_reduction <maximumf>, %15, %cst_12 [2] : vector<2x8x8xf32> to vector<2x8xf32>
    %17 = vector.shape_cast %16 : vector<2x8xf32> to vector<2x8x1xf32>
    %18 = vector.broadcast %17 : vector<2x8x1xf32> to vector<2x8x8xf32>
    %19 = arith.subf %7, %18 : vector<2x8x8xf32>
    %20 = math.exp %19 : vector<2x8x8xf32>
    %cst_13 = arith.constant 0.000000e+00 : f32
    %21 = vector.shape_cast %11 : vector<1x8x8xi1> to vector<1x8x8xi1>
    %22 = vector.broadcast %21 : vector<1x8x8xi1> to vector<2x8x8xi1>
    %23 = vector.broadcast %cst_13 : f32 to vector<2x8x8xf32>
    %24 = arith.select %22, %20, %23 : vector<2x8x8xi1>, vector<2x8x8xf32>
    %cst_14 = arith.constant dense<0.000000e+00> : vector<2x8xf32>
    %25 = vector.multi_reduction <add>, %24, %cst_14 [2] : vector<2x8x8xf32> to vector<2x8xf32>
    %26 = vector.shape_cast %25 : vector<2x8xf32> to vector<2x8x1xf32>
    %27 = tpu.reciprocal %26 : vector<2x8x1xf32> -> vector<2x8x1xf32>
    %28 = vector.broadcast %27 : vector<2x8x1xf32> to vector<2x8x8xf32>
    %29 = arith.mulf %24, %28 : vector<2x8x8xf32>
    %cst_15 = arith.constant dense<0.000000e+00> : vector<2x8x16xf32>
    %30 = tpu.matmul %29, %6, %cst_15 {dimension_numbers = #tpu.dot_dimension_numbers<[2], [1], [1], [2], [0, 0, 0, 1, 1, 2], [0], [0]>} : vector<2x8x8xf32>, vector<2x8x16xf32>, vector<2x8x16xf32> -> vector<2x8x16xf32>
    %c0_16 = arith.constant 0 : index
    %c0_17 = arith.constant 0 : index
    %c0_18 = arith.constant 0 : index
    %31 = vector.load %arg5[%c0_16, %c0_17, %c0_18] : memref<2x8x16xf32, #tpu.memory_space<vmem>>, vector<2x8x16xf32>
    tpu.vector_store %arg5[%c0_16, %c0_17, %c0_18], %30 {strides = array<i32>} : memref<2x8x16xf32, #tpu.memory_space<vmem>>, vector<2x8x16xf32>,
    return
  }
  func.func @transform_0(%arg0: i32) -> (i32, i32, i32) {
    %c0_i32 = arith.constant 0 : i32
    %c0_i32_0 = arith.constant 0 : i32
    %c0_i32_1 = arith.constant 0 : i32
    %c0_i32_2 = arith.constant 0 : i32
    return %c0_i32, %c0_i32_0, %c0_i32_1 : i32, i32, i32
  }
  func.func @transform_1(%arg0: i32) -> (i32, i32) {
    %c0_i32 = arith.constant 0 : i32
    %c0_i32_0 = arith.constant 0 : i32
    %c0_i32_1 = arith.constant 0 : i32
    return %c0_i32, %c0_i32_0 : i32, i32
  }
  func.func @transform_2(%arg0: i32) -> (i32, i32) {
    %c0_i32 = arith.constant 0 : i32
    %c0_i32_0 = arith.constant 0 : i32
    %c0_i32_1 = arith.constant 0 : i32
    return %c0_i32, %c0_i32_0 : i32, i32
  }
  func.func @transform_3(%arg0: i32) -> (i32, i32) {
    %c0_i32 = arith.constant 0 : i32
    %c0_i32_0 = arith.constant 0 : i32
    %c0_i32_1 = arith.constant 0 : i32
    return %c0_i32, %c0_i32_0 : i32, i32
  }
  func.func @transform_4(%arg0: i32) -> (i32, i32, i32) {
    %c0_i32 = arith.constant 0 : i32
    %c0_i32_0 = arith.constant 0 : i32
    %c0_i32_1 = arith.constant 0 : i32
    %c0_i32_2 = arith.constant 0 : i32
    return %c0_i32, %c0_i32_0, %c0_i32_1 : i32, i32, i32
  }
}

</mosaic_0001>

<bundles_post_ra>
// kernel: tpu_custom_call.1
= control target key start
LH: loop header
LB: loop body
LE: loop exit
PB: predicated region body
PF: predicated region fallthrough
CT: control target
= control target key end

     0   :  { %s842_s0 = inlined_call_operand.vmem [shape: f32[2,8,32], index: 0, kind: input, shape index: {}]   ;;  %s843_s1 = inlined_call_operand.vmem [shape: f32[32,16], index: 1, kind: input, shape index: {}]   ;;  %s844_s2 = inlined_call_operand.vmem [shape: f32[32,16], index: 2, kind: input, shape index: {}]   ;;  %s845_s3 = inlined_call_operand.vmem [shape: f32[32,16], index: 3, kind: input, shape index: {}]   ;;  %s846_s4 = inlined_call_operand.hbm [shape: f32[2,8,16], index: 4, kind: output, shape index: {}]  }
   0x1   :  { %v109_v0 = vld [vmem:[%s844_s2 + $0x18] sm:$0xff]  ;;  %v108_v2 = vld [vmem:[%s844_s2 + $0x10] sm:$0xff]  ;;  %v107_v4 = vld [vmem:[%s844_s2 + $0x8] sm:$0xff] }
   0x2   :  { %v23_v1 = vld [vmem:[%s843_s1 + $0x18] sm:$0xff]  ;;  %664 = vmatprep.subr.mxu1 %v109_v0  ;;  %v22_v3 = vld [vmem:[%s843_s1 + $0x10] sm:$0xff]  ;;  %v21_v5 = vld [vmem:[%s843_s1 + $0x8] sm:$0xff] }
   0x3   :  { %653 = vmatprep.subr.mxu0 %v23_v1  ;;  %665 = vmatpush3.msra.mxu1 %v109_v0 }
   0x4   :  { %654 = vmatpush3.msra.mxu0 %v23_v1  ;;  %666 = vmatprep.subr.mxu1 %v108_v2 }
   0x5   :  { %655 = vmatprep.subr.mxu0 %v22_v3 }
   0x6   :  { %9 = vsyncpa [#allocation3], 0  ;;  %667 = vmatpush3.msra.mxu1 %v108_v2  ;;  %656 = vmatpush3.msra.mxu0 %v22_v3  ;;  %v106_v6 = vld [vmem:[%s844_s2] sm:$0xff]  ;;  %vm24_vm0 = vcmask 261120   ;;  %v19_v9 = vld [vmem:[%s842_s0 + $0x8] sm:$0xff]  ;;  %v741_v10 = vmov 0.0   ;;  %v417_v19 = vlaneseq }
   0x7   :  { %v18_v7 = vld [vmem:[%s842_s0] sm:$0xff]  ;;  %668 = vmatprep.subr.mxu1 %v107_v4  ;;  %657 = vmatprep.subr.mxu0 %v21_v5  ;;  %vm742_vm1 = vmmov 0   ;;  %vm264_vm2 = vcmask 130048   ;;  %v188_v15 = vld [vmem:[%s845_s3 + $0x18] sm:$0xff]  ;;  %v187_v16 = vld [vmem:[%s845_s3 + $0x10] sm:$0xff]  ;;  %vm426_vm4 = vcmask 64512  }
   0x8   :  { %v20_v8 = vld [vmem:[%s843_s1] sm:$0xff]  ;;  %669 = vmatpush3.msra.mxu1 %v107_v4  ;;  %658 = vmatpush3.msra.mxu0 %v21_v5  ;;  %v186_v17 = vld [vmem:[%s845_s3 + $0x8] sm:$0xff]  ;;  %v418_v20 = vshrl.u32 %v417_v19, 7  ;;  %v420_v21 = vand.u32 127, %v417_v19 }
   0x9   :  { %670 = vmatprep.subr.mxu1 %v106_v6  ;;  %672 = vmatprep.mubr.msk.f32.mxu1 %vm24_vm0, %v18_v7  ;;  %v185_v18 = vld [vmem:[%s845_s3] sm:$0xff]  ;;  %s743_s3 = smov [#allocation2]  }
   0xa   :  { %671 = vmatpush3.msra.mxu1 %v106_v6  ;;  %659 = vmatprep.subr.mxu0 %v20_v8  ;;  %vm421_vm3 = vcmp.le.s32.totalorder %v420_v21, %v418_v20  ;;  %s604_s14 = sshll.u32 %s743_s3, 4  ;;  %s605_s14 = int_to_ptr.vmem [resolvable:$true] %s604_s14 }
   0xb   :  { %673 = vmatmul.mubr.msk.f32.vlgmr.msra.gmra.mxu1 %vm24_vm0, %v19_v9  ;;  %660 = vmatpush3.msra.mxu0 %v20_v8  ;;  %s719_s15 = scalar_lea.vmem %s605_s14, 256  ;;  %p724_p1 = scmp.lt.s32.totalorder %s605_s14, %s605_s14 }
   0xc   :  { %661 = vmatprep.mubr.msk.f32.mxu0 %vm24_vm0, %v18_v7  ;;  %686 = vmatprep.subr.mxu1 %v741_v10  ;;  %p720_p0 = scmp.ne.s32.totalorder %s605_s14, %s719_s15  ;;  %p725_p2 = scmp.lt.s32.totalorder %s719_s15, %s719_s15 }
   0xd   :  { %662 = vmatmul.mubr.msk.f32.vlgmr.msra.gmra.mxu0 %vm24_vm0, %v19_v9  ;;  %688 = vmatprep.mubr.msk.f32.mxu1 %vm742_vm1, %v741_v10 }
   0xe   :  { %683 = vmatprep.mubr.msk.f32.mxu0 %vm24_vm0, %v18_v7  ;;  %675 = vmatprep.subr.mxu0 %v188_v15  ;;  %p726_p3 = por %p725_p2, %p724_p1 }
   0xf   :  { %676 = vmatpush3.msra.mxu0 %v188_v15 }
  0x10   :  { %677 = vmatprep.subr.mxu0 %v187_v16  ;;  %p727_p4 = pnand %p726_p3, %p720_p0 }
  0x11   :  { %678 = vmatpush3.msra.mxu0 %v187_v16 }
  0x12   :  { %679 = vmatprep.subr.mxu0 %v186_v17 }
  0x13   :  { %680 = vmatpush3.msra.mxu0 %v186_v17 }
  0x14   :  { %681 = vmatprep.subr.mxu0 %v185_v18 }
  0x15   :  { %682 = vmatpush3.msra.mxu0 %v185_v18 }
  0x16   :  { %684 = vmatmul.mubr.msk.f32.vlgmr.msra.gmra.mxu0 %vm24_vm0, %v19_v9  ;;  %696 = vmatprep.subr.mxu0 %v741_v10 }
  0x17   :  { %698 = vmatprep.mubr.msk.f32.mxu0 %vm742_vm1, %v741_v10 }
  0xcb   :  { %v674_v11 = vpop.f32.mrf.mxu1 }
  0xcd   :  { %v663_v12 = vpop.f32.mrf.mxu0  ;;  %v176_v13 = vpop.f32.mrf.mxu1 }
  0xce   :  { %687 = vmatpush3.xpose.msk.msra.mxu1 %vm264_vm2, %v176_v13 }
  0xcf   :  { %691 = vmatprep.subr.mxu1 %v741_v10  ;;  %v97_v14 = vpop.f32.mrf.mxu0 }
  0xd1   :  { %689 = vmatmul.mubr.msk.f32.vlgmr.msra.gmra.mxu1 %vm264_vm2, %v97_v14 }
  0xd2   :  { %692 = vmatpush3.xpose.msk.msra.mxu1 %vm264_vm2, %v674_v11  ;;  %693 = vmatprep.mubr.msk.f32.mxu1 %vm742_vm1, %v741_v10 }
  0xd3   :  { %701 = vmatprep.subr.mxu1 %v741_v10 }
  0xd5   :  { %694 = vmatmul.mubr.msk.f32.vlgmr.msra.gmra.mxu1 %vm264_vm2, %v663_v12 }
  0xd6   :  { %703 = vmatprep.mubr.msk.f32.mxu1 %vm742_vm1, %v741_v10  ;;  %v685_v42 = vpop.f32.mrf.mxu0 }
  0xd7   :  { %702 = vmatpush3.msra.mxu1 %v685_v42 }
  0xd8   :  { %v255_v43 = vpop.f32.mrf.mxu0 }
  0xd9   :  { %697 = vmatpush3.msra.mxu0 %v255_v43 }
 0x191   :  { %v337_v22 = vpop.f32.mrf.mxu1 }
 0x192   :  { %v424_v23 = vsel %vm421_vm3, %v337_v22, -3e+38 }
 0x193   :  { %v690_v24 = vpop.f32.mrf.mxu1  ;;  %v427_v25 = vsel %vm426_vm4, %v424_v23, -inf }
 0x194   :  { %428 = vmax.xlane.f32.xlu0 %v427_v25 }
 0x195   :  { %v413_v26 = vpop.f32.mrf.mxu1 }
 0x196   :  { %v425_v27 = vsel %vm421_vm3, %v413_v26, -3e+38 }
 0x197   :  { %v695_v28 = vpop.f32.mrf.mxu1  ;;  %v430_v29 = vsel %vm426_vm4, %v425_v27, -inf }
 0x198   :  { %431 = vmax.xlane.f32.xlu0 %v430_v29 }
 0x21d   :  { %v429_v30 = vpop.xlane.xlu0 %428 }
 0x21e   :  { %v433_v31 = vsub.f32 %v337_v22, %v429_v30 }
 0x220   :  { %v435_v32 = vmul.f32 1.442695, %v433_v31 }
 0x221   :  { %v432_v33 = vpop.xlane.xlu0 %431 }
 0x222   :  { %711 = vpow2.f32 %v435_v32  ;;  %v434_v34 = vsub.f32 %v413_v26, %v432_v33 }
 0x224   :  { %v437_v35 = vmul.f32 1.442695, %v434_v34 }
 0x226   :  { %713 = vpow2.f32 %v437_v35 }
 0x22f   :  { %v712_v36 = vpop.eup %711 }
 0x230   :  { %v439_v37 = vsel %vm421_vm3, %v712_v36, 0.0 }
 0x231   :  { %v441_v38 = vsel %vm426_vm4, %v439_v37, 0.0 }
 0x232   :  { %442 = vadd.xlane.f32.xlu1 %v441_v38 }
 0x233   :  { %v714_v39 = vpop.eup %713 }
 0x234   :  { %v440_v40 = vsel %vm421_vm3, %v714_v39, 0.0 }
 0x235   :  { %v444_v41 = vsel %vm426_vm4, %v440_v40, 0.0 }
 0x236   :  { %445 = vadd.xlane.f32.xlu1 %v444_v41 }
 0x2bb   :  { %v443_v44 = vpop.xlane.xlu1 %442 }
 0x2bc   :  { %715 = vrcp.f32 %v443_v44 }
 0x2bf   :  { %v446_v45 = vpop.xlane.xlu1 %445 }
 0x2c0   :  { %717 = vrcp.f32 %v446_v45 }
 0x2c9   :  { %v716_v46 = vpop.eup %715 }
 0x2ca   :  { %v449_v47 = vmul.f32 %v716_v46, %v439_v37 }
 0x2cc   :  { %699 = vmatmul.mubr.msk.f32.vlgmr.msra.gmra.mxu0 %vm426_vm4, %v449_v47 }
 0x2cd   :  { %v718_v48 = vpop.eup %717 }
 0x2ce   :  { %v450_v49 = vmul.f32 %v718_v48, %v440_v40 }
 0x2d0   :  { %704 = vmatmul.mubr.msk.f32.vlgmr.msra.gmra.mxu1 %vm426_vm4, %v450_v49 }
 0x38c   :  { %v520_v50 = vpop.f32.mrf.mxu0 }
 0x38d   :  { %597 = vst.msk [vmem:[#allocation2] sm:$0xff] %vm264_vm2, %v520_v50 }
 0x38e   :  { %v700_v51 = vpop.f32.mrf.mxu0 }
 0x390   :  { %v593_v52 = vpop.f32.mrf.mxu1 }
 0x391   :  { %598 = vst.msk [vmem:[#allocation2 + $0x8] sm:$0xff] %vm264_vm2, %v593_v52 }
 0x392   :  { %v705_v53 = vpop.f32.mrf.mxu1 }
 0x393   :  { %730 = shalt.err (!%p727_p4)
}
 0x394   :  { %s744_s16 = smov 128   ;;  %s745_s17 = smov 8  }
 0x395   :  { %610 = dma.vmem_to_hbm [thread:$0]  %s605_s14, 256, %s846_s4, [#allocation3], %s744_s16, %s744_s16, %s745_s17  }
 0x396   :  { %739 = dma.done.wait [#allocation3], 256  }
 0x397   :  { %740 = vsyncadd [#allocation3], 4294967040 }
 0x398   :  { %614 = vsyncpa [#allocation3], 1 }

</bundles_post_ra>
